<compile_context>
chip_gen: v7x
topology: tpu7x:2x2x1
jax: 0.10.0
libtpu: 0.0.40
codegen_flags: <defaults>
</compile_context>

<pallas_src>
import functools

import jax
import jax.numpy as jnp
from jax.experimental import pallas as pl
from jax.experimental.pallas import tpu as pltpu

_LANE = 128       # lane width (last dim granularity)
_SUBLANE = 8      # sublane width (second-to-last dim granularity, f32)
_TILE_CAP = 1024  # max batch-tile rows (85%+ of HBM roofline for streaming)


def _round_up(v, m):
    return ((v + m - 1) // m) * m


def _vmem_capacity_bytes():
    """Physical VMEM per TensorCore; conservative fallback if unqueryable."""
    try:
        return int(pltpu.get_tpu_info().vmem_capacity_bytes)
    except Exception:
        return 64 << 20  # v7x per-TC size: the smallest across generations


def _choose_tile(batch, in_p, out_p, max_feat_p, resident_bytes, vmem_cap):
    """Pick the batch tile from a VMEM budget instead of a hard-coded cap."""
    batch_p = _round_up(batch, _SUBLANE)
    # Per-row VMEM cost that scales with tile_b:
    #   double-buffered input tile + double-buffered output tile (f32 worst
    #   case) + two live f32 activation temps + one bf16 matmul operand.
    per_row = (2 * in_p + 2 * out_p + 2 * max_feat_p) * 4 + max_feat_p * 2
    budget = int(0.75 * vmem_cap) - resident_bytes
    fit_rows = max(_SUBLANE, (budget // max(per_row, 1)) // _SUBLANE * _SUBLANE)
    tile_b = min(_TILE_CAP, batch_p, fit_rows)
    if batch_p > _SUBLANE and tile_b >= batch_p:
        # Force >= 2 grid steps so v7x's two TensorCores both get a share of
        # the "parallel" batch axis; ~0.35 us of overhead on 1-TC chips.
        tile_b = _round_up((batch_p + 1) // 2, _SUBLANE)
    batch_padded = _round_up(batch, tile_b)
    return tile_b, batch_padded, per_row


def _mlp_fused_kernel(n_layers, x_ref, *refs):
    """Fused MLP body.

    refs = (w1, b1, w2, b2, ..., wn, bn, o_ref); everything lives in VMEM.
    Layers are unrolled at trace time; the activation stays in vregs/VMEM
    between layers (no HBM traffic between layers).  Matmuls take bf16
    operands and accumulate in f32; bias + ReLU run in f32.
    """
    o_ref = refs[-1]
    act = x_ref[...].astype(jnp.float32)        # (tile_b, in_p)
    for i in range(n_layers):
        w = refs[2 * i][...]                    # (in_p, out_p) bf16, zero-padded
        b = refs[2 * i + 1][...]                # (1, out_p)    f32,  zero-padded
        acc = jnp.dot(act.astype(jnp.bfloat16), w,
                      preferred_element_type=jnp.float32)
        act = jnp.maximum(acc + b, 0.0)
    o_ref[...] = act.astype(o_ref.dtype)


def init_mlp_params(key, n_layers, input_size, hidden_size, output_size):
    """Deterministic init mirroring nn.Linear's default U(-1/sqrt(in), 1/sqrt(in)).

    Returns a list of (w_t, b) with w_t stored as (in, out) f32 (un-padded).
    """
    params = []
    for i in range(n_layers):
        if i == 0:
            in_f, out_f = input_size, hidden_size
        elif i == n_layers - 1:
            in_f, out_f = hidden_size, output_size
        else:
            in_f, out_f = hidden_size, hidden_size
        key, kw, kb = jax.random.split(key, 3)
        bound = 1.0 / jnp.sqrt(jnp.float32(in_f))
        # PyTorch layout (out, in); transpose once here for the kernel.
        w = jax.random.uniform(kw, (out_f, in_f), jnp.float32, -bound, bound)
        b = jax.random.uniform(kb, (out_f,), jnp.float32, -bound, bound)
        params.append((w.T, b))  # (in, out), (out,)
    return params


def pad_params(params):
    """Zero-pad weights/biases to lane-multiple feature dims, once.

    Weights are stored as bf16 (MXU operands); biases stay f32 (added to the
    f32 accumulator).
    """
    padded = []
    for w_t, b in params:
        in_f, out_f = w_t.shape
        in_p = _round_up(in_f, _LANE)
        out_p = _round_up(out_f, _LANE)
        w_pad = (jnp.zeros((in_p, out_p), jnp.bfloat16)
                 .at[:in_f, :out_f].set(w_t.astype(jnp.bfloat16)))
        b_pad = (jnp.zeros((1, out_p), jnp.float32)
                 .at[0, :out_f].set(b.astype(jnp.float32)))
        padded.append((w_pad, b_pad))
    return padded


@functools.partial(jax.jit, static_argnames=("out_features",))
def mlp_forward(x, padded_params, out_features):
    """forward(): run every LinearReLU in order inside one fused kernel."""
    n_layers = len(padded_params)
    batch, in_f = x.shape
    in_p = padded_params[0][0].shape[0]
    out_p = padded_params[-1][0].shape[1]
    max_feat_p = max(in_p, max(w.shape[1] for w, _ in padded_params))

    # Single-buffered resident parameter footprint (bf16 W + f32 b).
    resident_bytes = sum(w.size * w.dtype.itemsize + b.size * b.dtype.itemsize
                         for w, b in padded_params)
    vmem_cap = _vmem_capacity_bytes()
    tile_b, batch_padded, per_row = _choose_tile(
        batch, in_p, out_p, max_feat_p, resident_bytes, vmem_cap)
    grid = (batch_padded // tile_b,)

    # Skip the wrapper-side padded copy (an extra HBM pass) when the input is
    # already aligned; otherwise pad straight into bf16 (half the bytes).
    if batch == batch_padded and in_f == in_p:
        x_in = x
    else:
        x_in = (jnp.zeros((batch_padded, in_p), jnp.bfloat16)
                .at[:batch, :in_f].set(x.astype(jnp.bfloat16)))

    in_specs = [pl.BlockSpec((tile_b, in_p), lambda i: (i, 0))]
    flat_inputs = [x_in]
    for w_pad, b_pad in padded_params:
        # Constant index_map + single buffering: weights/biases are DMA'd
        # once and stay resident in VMEM across all batch tiles.
        in_specs.append(pl.BlockSpec(w_pad.shape, lambda i: (0, 0),
                                     pipeline_mode=pl.Buffered(1)))
        in_specs.append(pl.BlockSpec(b_pad.shape, lambda i: (0, 0),
                                     pipeline_mode=pl.Buffered(1)))
        flat_inputs.append(w_pad)
        flat_inputs.append(b_pad)

    # Explicit scoped-VMEM limit from the actual footprint (+25% headroom),
    # clamped to physical capacity; default scoped limits (16/32 MiB) would
    # otherwise cap tile_b well below what the hardware allows.
    vmem_needed = resident_bytes + tile_b * per_row
    vmem_limit = int(min(vmem_cap, max(32 << 20, int(vmem_needed * 1.25))))

    out_pad = pl.pallas_call(
        functools.partial(_mlp_fused_kernel, n_layers),
        out_shape=jax.ShapeDtypeStruct((batch_padded, out_p), x.dtype),
        grid_spec=pl.GridSpec(
            grid=grid,
            in_specs=in_specs,
            out_specs=pl.BlockSpec((tile_b, out_p), lambda i: (i, 0)),
        ),
        compiler_params=pltpu.CompilerParams(
            dimension_semantics=("parallel",),
            vmem_limit_bytes=vmem_limit,
        ),
    )(*flat_inputs)

    # Un-pad only when needed; output_selection = slice(None, None) is the
    # identity and is covered by this slice.
    if batch == batch_padded and out_features == out_p:
        return out_pad
    return out_pad[:batch, :out_features]


def mlp_forward_ref(x, params):
    for w_t, b in params:
        x = jnp.maximum(x @ w_t + b[None, :], 0.0)
    return x


if __name__ == "__main__":
    n_layers = 3
    batch = 2
    input_size = 16
    hidden_size = 32
    output_size = 8

    key = jax.random.PRNGKey(0)
    kx, kp = jax.random.split(key)
    x = jax.random.normal(kx, (batch, input_size), jnp.float32)
    params = init_mlp_params(kp, n_layers, input_size, hidden_size, output_size)
    padded_params = pad_params(params)

    out = mlp_forward(x, padded_params, output_size)
    out = jax.block_until_ready(out)

    ref = mlp_forward_ref(x, params)
    assert out.shape == (batch, output_size)
    # bf16 MXU operands with f32 accumulation vs the pure-f32 reference.
    assert jnp.allclose(out, ref, atol=3e-2, rtol=3e-2)

    print("KERNEL_OK")
</pallas_src>

<mosaic_0001>
module attributes {stable_mosaic.version = 11 : i64} {
  func.func @_mlp_fused_kernel(%arg0: i32, %arg1: memref<8x128xbf16, #tpu.memory_space<vmem>>, %arg2: memref<128x128xbf16, #tpu.memory_space<vmem>>, %arg3: memref<1x128xf32, #tpu.memory_space<vmem>>, %arg4: memref<128x128xbf16, #tpu.memory_space<vmem>>, %arg5: memref<1x128xf32, #tpu.memory_space<vmem>>, %arg6: memref<128x128xbf16, #tpu.memory_space<vmem>>, %arg7: memref<1x128xf32, #tpu.memory_space<vmem>>, %arg8: memref<8x128xf32, #tpu.memory_space<vmem>>) attributes {dimension_semantics = [#tpu.dimension_semantics<parallel>], iteration_bounds = array<i64: 1>, scalar_prefetch = 0 : i64, scratch_operands = 0 : i64, tpu.core_type = #tpu.core_type<tc>, window_params = [{transform_indices = @transform_0, window_bounds = array<i64: 8, 128>}, {pipeline_mode = #tpu.pipeline_mode<synchronous>, transform_indices = @transform_1, window_bounds = array<i64: 128, 128>}, {pipeline_mode = #tpu.pipeline_mode<synchronous>, transform_indices = @transform_2, window_bounds = array<i64: 1, 128>}, {pipeline_mode = #tpu.pipeline_mode<synchronous>, transform_indices = @transform_3, window_bounds = array<i64: 128, 128>}, {pipeline_mode = #tpu.pipeline_mode<synchronous>, transform_indices = @transform_4, window_bounds = array<i64: 1, 128>}, {pipeline_mode = #tpu.pipeline_mode<synchronous>, transform_indices = @transform_5, window_bounds = array<i64: 128, 128>}, {pipeline_mode = #tpu.pipeline_mode<synchronous>, transform_indices = @transform_6, window_bounds = array<i64: 1, 128>}, {transform_indices = @transform_7, window_bounds = array<i64: 8, 128>}]} {
    %c0 = arith.constant 0 : index
    %c0_0 = arith.constant 0 : index
    %0 = vector.load %arg1[%c0, %c0_0] : memref<8x128xbf16, #tpu.memory_space<vmem>>, vector<8x128xbf16>
    %1 = arith.extf %0 : vector<8x128xbf16> to vector<8x128xf32>
    %c0_1 = arith.constant 0 : index
    %c0_2 = arith.constant 0 : index
    %2 = vector.load %arg2[%c0_1, %c0_2] : memref<128x128xbf16, #tpu.memory_space<vmem>>, vector<128x128xbf16>
    %c0_3 = arith.constant 0 : index
    %c0_4 = arith.constant 0 : index
    %3 = vector.load %arg3[%c0_3, %c0_4] : memref<1x128xf32, #tpu.memory_space<vmem>>, vector<1x128xf32>
    %4 = arith.truncf %1 : vector<8x128xf32> to vector<8x128xbf16>
    %cst = arith.constant dense<0.000000e+00> : vector<8x128xf32>
    %5 = tpu.matmul %4, %2, %cst {dimension_numbers = #tpu.dot_dimension_numbers<[1], [0], [0], [1], [0, 0, 1, 1], [], []>} : vector<8x128xbf16>, vector<128x128xbf16>, vector<8x128xf32> -> vector<8x128xf32>
    %6 = vector.broadcast %3 : vector<1x128xf32> to vector<8x128xf32>
    %7 = arith.addf %5, %6 : vector<8x128xf32>
    %cst_5 = arith.constant 0.000000e+00 : f32
    %8 = vector.broadcast %cst_5 : f32 to vector<8x128xf32>
    %9 = arith.maximumf %7, %8 : vector<8x128xf32>
    %c0_6 = arith.constant 0 : index
    %c0_7 = arith.constant 0 : index
    %10 = vector.load %arg4[%c0_6, %c0_7] : memref<128x128xbf16, #tpu.memory_space<vmem>>, vector<128x128xbf16>
    %c0_8 = arith.constant 0 : index
    %c0_9 = arith.constant 0 : index
    %11 = vector.load %arg5[%c0_8, %c0_9] : memref<1x128xf32, #tpu.memory_space<vmem>>, vector<1x128xf32>
    %12 = arith.truncf %9 : vector<8x128xf32> to vector<8x128xbf16>
    %cst_10 = arith.constant dense<0.000000e+00> : vector<8x128xf32>
    %13 = tpu.matmul %12, %10, %cst_10 {dimension_numbers = #tpu.dot_dimension_numbers<[1], [0], [0], [1], [0, 0, 1, 1], [], []>} : vector<8x128xbf16>, vector<128x128xbf16>, vector<8x128xf32> -> vector<8x128xf32>
    %14 = vector.broadcast %11 : vector<1x128xf32> to vector<8x128xf32>
    %15 = arith.addf %13, %14 : vector<8x128xf32>
    %cst_11 = arith.constant 0.000000e+00 : f32
    %16 = vector.broadcast %cst_11 : f32 to vector<8x128xf32>
    %17 = arith.maximumf %15, %16 : vector<8x128xf32>
    %c0_12 = arith.constant 0 : index
    %c0_13 = arith.constant 0 : index
    %18 = vector.load %arg6[%c0_12, %c0_13] : memref<128x128xbf16, #tpu.memory_space<vmem>>, vector<128x128xbf16>
    %c0_14 = arith.constant 0 : index
    %c0_15 = arith.constant 0 : index
    %19 = vector.load %arg7[%c0_14, %c0_15] : memref<1x128xf32, #tpu.memory_space<vmem>>, vector<1x128xf32>
    %20 = arith.truncf %17 : vector<8x128xf32> to vector<8x128xbf16>
    %cst_16 = arith.constant dense<0.000000e+00> : vector<8x128xf32>
    %21 = tpu.matmul %20, %18, %cst_16 {dimension_numbers = #tpu.dot_dimension_numbers<[1], [0], [0], [1], [0, 0, 1, 1], [], []>} : vector<8x128xbf16>, vector<128x128xbf16>, vector<8x128xf32> -> vector<8x128xf32>
    %22 = vector.broadcast %19 : vector<1x128xf32> to vector<8x128xf32>
    %23 = arith.addf %21, %22 : vector<8x128xf32>
    %cst_17 = arith.constant 0.000000e+00 : f32
    %24 = vector.broadcast %cst_17 : f32 to vector<8x128xf32>
    %25 = arith.maximumf %23, %24 : vector<8x128xf32>
    %c0_18 = arith.constant 0 : index
    %c0_19 = arith.constant 0 : index
    %26 = vector.load %arg8[%c0_18, %c0_19] : memref<8x128xf32, #tpu.memory_space<vmem>>, vector<8x128xf32>
    tpu.vector_store %arg8[%c0_18, %c0_19], %25 {strides = array<i32>} : memref<8x128xf32, #tpu.memory_space<vmem>>, vector<8x128xf32>,
    return
  }
  func.func @transform_0(%arg0: i32) -> (i32, i32) {
    %c0_i32 = arith.constant 0 : i32
    %c0_i32_0 = arith.constant 0 : i32
    return %arg0, %c0_i32 : i32, i32
  }
  func.func @transform_1(%arg0: i32) -> (i32, i32) {
    %c0_i32 = arith.constant 0 : i32
    %c0_i32_0 = arith.constant 0 : i32
    %c0_i32_1 = arith.constant 0 : i32
    return %c0_i32, %c0_i32_0 : i32, i32
  }
  func.func @transform_2(%arg0: i32) -> (i32, i32) {
    %c0_i32 = arith.constant 0 : i32
    %c0_i32_0 = arith.constant 0 : i32
    %c0_i32_1 = arith.constant 0 : i32
    return %c0_i32, %c0_i32_0 : i32, i32
  }
  func.func @transform_3(%arg0: i32) -> (i32, i32) {
    %c0_i32 = arith.constant 0 : i32
    %c0_i32_0 = arith.constant 0 : i32
    %c0_i32_1 = arith.constant 0 : i32
    return %c0_i32, %c0_i32_0 : i32, i32
  }
  func.func @transform_4(%arg0: i32) -> (i32, i32) {
    %c0_i32 = arith.constant 0 : i32
    %c0_i32_0 = arith.constant 0 : i32
    %c0_i32_1 = arith.constant 0 : i32
    return %c0_i32, %c0_i32_0 : i32, i32
  }
  func.func @transform_5(%arg0: i32) -> (i32, i32) {
    %c0_i32 = arith.constant 0 : i32
    %c0_i32_0 = arith.constant 0 : i32
    %c0_i32_1 = arith.constant 0 : i32
    return %c0_i32, %c0_i32_0 : i32, i32
  }
  func.func @transform_6(%arg0: i32) -> (i32, i32) {
    %c0_i32 = arith.constant 0 : i32
    %c0_i32_0 = arith.constant 0 : i32
    %c0_i32_1 = arith.constant 0 : i32
    return %c0_i32, %c0_i32_0 : i32, i32
  }
  func.func @transform_7(%arg0: i32) -> (i32, i32) {
    %c0_i32 = arith.constant 0 : i32
    %c0_i32_0 = arith.constant 0 : i32
    return %arg0, %c0_i32 : i32, i32
  }
}

</mosaic_0001>

<bundles_post_ra>
// kernel: mlp_forward.1
= control target key start
LH: loop header
LB: loop body
LE: loop exit
PB: predicated region body
PF: predicated region fallthrough
CT: control target
= control target key end

     0   :  { %12 = vsyncpa [#allocation3], 0  ;;  %s773_s0 = inlined_call_operand.vmem [shape: bf16[8,128], index: 0, kind: input, shape index: {}]   ;;  %s774_s1 = inlined_call_operand.hbm [shape: bf16[128,128], index: 1, kind: input, shape index: {}]   ;;  %s775_s2 = inlined_call_operand.vmem [shape: f32[1,128], index: 2, kind: input, shape index: {}]   ;;  %s776_s3 = inlined_call_operand.hbm [shape: bf16[128,128], index: 3, kind: input, shape index: {}]   ;;  %s777_s4 = inlined_call_operand.vmem [shape: f32[1,128], index: 4, kind: input, shape index: {}]   ;;  %s778_s5 = inlined_call_operand.hbm [shape: bf16[128,128], index: 5, kind: input, shape index: {}]   ;;  %s779_s6 = inlined_call_operand.vmem [shape: f32[1,128], index: 6, kind: input, shape index: {}]   ;;  %s780_s7 = inlined_call_operand.vmem [shape: f32[8,128], index: 7, kind: output, shape index: {}]  }
   0x1   :  { %13 = vsyncpa [#allocation5], 0  ;;  %s629_s24 = smov [#allocation4]   ;;  %s630_s26 = smov [#allocation2]  }
   0x2   :  { %s35_s25 = sshll.u32 %s629_s24, 4  ;;  %s21_s27 = sshll.u32 %s630_s26, 4  ;;  %s36_s25 = int_to_ptr.vmem [resolvable:$true] %s35_s25  ;;  %s676_s27 = int_to_ptr.vmem [resolvable:$true] %s21_s27 }
   0x3   :  { %s559_s30 = scalar_lea.hbm %s776_s3, 1024 }
   0x4   :  { %p560_p0 = scmp.ne.s32.totalorder %s776_s3, %s559_s30  ;;  %p563_p1 = scmp.lt.u32.totalorder %s559_s30, %s776_s3 }
   0x6   :  { %p565_p2 = pnand %p563_p1, %p560_p0 }
   0x8   :  { %568 = shalt.err (!%p565_p2)
}
   0x9   :  { %s569_s12 = scalar_lea.vmem %s36_s25, 1024  ;;  %p574_p4 = scmp.lt.s32.totalorder %s36_s25, %s36_s25 }
   0xa   :  { %p570_p3 = scmp.ne.s32.totalorder %s36_s25, %s569_s12  ;;  %p575_p5 = scmp.lt.s32.totalorder %s569_s12, %s569_s12 }
   0xc   :  { %p576_p6 = por %p575_p5, %p574_p4 }
   0xe   :  { %p577_p7 = pnand %p576_p6, %p570_p3 }
  0x10   :  { %580 = shalt.err (!%p577_p7)
}
  0x11   :  { %s631_s13 = smov 64   ;;  %s632_s14 = smov 4  }
  0x12   :  { %41 = dma.hbm_to_vmem [thread:$0]  %s776_s3, 1024, %s36_s25, [#allocation5], %s631_s13, %s631_s13, %s632_s14  }
  0x13   :  { %s581_s19 = scalar_lea.hbm %s774_s1, 1024 }
  0x14   :  { %p582_p8 = scmp.ne.s32.totalorder %s774_s1, %s581_s19  ;;  %p585_p9 = scmp.lt.u32.totalorder %s581_s19, %s774_s1 }
  0x16   :  { %p587_p10 = pnand %p585_p9, %p582_p8 }
  0x18   :  { %590 = shalt.err (!%p587_p10)
}
  0x19   :  { %s591_s24 = scalar_lea.vmem %s676_s27, 1024  ;;  %p596_p12 = scmp.lt.s32.totalorder %s676_s27, %s676_s27 }
  0x1a   :  { %p592_p11 = scmp.ne.s32.totalorder %s676_s27, %s591_s24  ;;  %p597_p13 = scmp.lt.s32.totalorder %s591_s24, %s591_s24 }
  0x1c   :  { %p598_p0 = por %p597_p13, %p596_p12 }
  0x1e   :  { %p599_p1 = pnand %p598_p0, %p592_p11 }
  0x20   :  { %602 = shalt.err (!%p599_p1)
}
  0x21   :  { %27 = dma.hbm_to_vmem [thread:$0]  %s774_s1, 1024, %s676_s27, [#allocation3], %s631_s13, %s631_s13, %s632_s14  }
  0x22   :  { %s633_s26 = smov [#allocation6]   ;;  %s603_s8 = scalar_lea.hbm %s778_s5, 1024 }
  0x23   :  { %s49_s28 = sshll.u32 %s633_s26, 4  ;;  %p604_p2 = scmp.ne.s32.totalorder %s778_s5, %s603_s8  ;;  %s50_s28 = int_to_ptr.vmem [resolvable:$true] %s49_s28 }
  0x24   :  { %p607_p3 = scmp.lt.u32.totalorder %s603_s8, %s778_s5 }
  0x26   :  { %p609_p4 = pnand %p607_p3, %p604_p2 }
  0x28   :  { %612 = shalt.err (!%p609_p4)
}
  0x29   :  { %s613_s15 = scalar_lea.vmem %s50_s28, 1024  ;;  %p618_p6 = scmp.lt.s32.totalorder %s50_s28, %s50_s28 }
  0x2a   :  { %p614_p5 = scmp.ne.s32.totalorder %s50_s28, %s613_s15  ;;  %p619_p7 = scmp.lt.s32.totalorder %s613_s15, %s613_s15 }
  0x2c   :  { %p620_p8 = por %p619_p7, %p618_p6 }
  0x2e   :  { %p621_p9 = pnand %p620_p8, %p614_p5 }
  0x30   :  { %624 = shalt.err (!%p621_p9)
}
  0x31   :  { %55 = dma.hbm_to_vmem [thread:$0]  %s778_s5, 1024, %s50_s28, [#allocation5], %s631_s13, %s631_s13, %s632_s14  }
  0x32   :  { %625 = dma.done.wait [#allocation3], 1024  }
  0x33   :  { %626 = vsyncadd [#allocation3], 4294966272 }
  0x34   :  { %627 = dma.done.wait [#allocation5], 2048  }
  0x35   :  { %628 = vsyncadd [#allocation5], 4294965248  ;;  %v634_v0 = vmov 0.0   ;;  %vm635_vm0 = vmmov 0   ;;  %v535_v1 = vld [vmem:[#allocation2] sm:$0xff]   ;;  %v536_v2 = vld [vmem:[#allocation2 + $0x8] sm:$0xff]  }
  0x36   :  { %468 = vmatprep.subr.bf16.mxu0 %v634_v0  ;;  %484 = vmatprep.mubr.msk.bf16.mxu0 %vm635_vm0, %v634_v0  ;;  %v537_v3 = vld [vmem:[#allocation2 + $0x10] sm:$0xff]   ;;  %v543_v4 = vld [vmem:[#allocation4] sm:$0xff]   ;;  %v538_v5 = vld [vmem:[#allocation2 + $0x18] sm:$0xff]  }
  0x37   :  { %488 = vmatprep.subr.bf16.mxu1 %v634_v0  ;;  %504 = vmatprep.mubr.msk.bf16.mxu1 %vm635_vm0, %v634_v0  ;;  %v544_v6 = vld [vmem:[#allocation4 + $0x8] sm:$0xff]   ;;  %v539_v7 = vld [vmem:[#allocation2 + $0x20] sm:$0xff]   ;;  %v545_v8 = vld [vmem:[#allocation4 + $0x10] sm:$0xff]  }
  0x38   :  { %469 = vmatpush3.bf16.msra.mxu0 %v535_v1  ;;  %489 = vmatpush3.bf16.msra.mxu1 %v543_v4  ;;  %v540_v9 = vld [vmem:[#allocation2 + $0x28] sm:$0xff]   ;;  %v546_v10 = vld [vmem:[#allocation4 + $0x18] sm:$0xff]   ;;  %v541_v11 = vld [vmem:[#allocation2 + $0x30] sm:$0xff]  }
  0x39   :  { %470 = vmatprep.subr.bf16.mxu0 %v634_v0  ;;  %490 = vmatprep.subr.bf16.mxu1 %v634_v0  ;;  %v547_v12 = vld [vmem:[#allocation4 + $0x20] sm:$0xff]   ;;  %v542_v13 = vld [vmem:[#allocation2 + $0x38] sm:$0xff]   ;;  %v548_v14 = vld [vmem:[#allocation4 + $0x28] sm:$0xff]  }
  0x3a   :  { %v68_v15 = vld [vmem:[%s773_s0] sm:$0xf]  ;;  %v549_v16 = vld [vmem:[#allocation4 + $0x30] sm:$0xff]   ;;  %v550_v17 = vld [vmem:[#allocation4 + $0x38] sm:$0xff]  }
  0x3b   :  { %v551_v18 = vld [vmem:[#allocation6] sm:$0xff]   ;;  %v552_v19 = vld [vmem:[#allocation6 + $0x8] sm:$0xff]   ;;  %v553_v20 = vld [vmem:[#allocation6 + $0x10] sm:$0xff]  }
  0x3c   :  { %471 = vmatpush3.bf16.msra.mxu0 %v536_v2  ;;  %491 = vmatpush3.bf16.msra.mxu1 %v544_v6  ;;  %v554_v21 = vld [vmem:[#allocation6 + $0x18] sm:$0xff]   ;;  %v555_v22 = vld [vmem:[#allocation6 + $0x20] sm:$0xff]   ;;  %v556_v23 = vld [vmem:[#allocation6 + $0x28] sm:$0xff]  }
  0x3d   :  { %472 = vmatprep.subr.bf16.mxu0 %v634_v0  ;;  %492 = vmatprep.subr.bf16.mxu1 %v634_v0  ;;  %v414_v24 = vld [vmem:[%s775_s2] ss:$0 sm:$0xff]  ;;  %v557_v32 = vld [vmem:[#allocation6 + $0x30] sm:$0xff]   ;;  %v558_v33 = vld [vmem:[#allocation6 + $0x38] sm:$0xff]  }
  0x3e   :  { %v423_v34 = vld [vmem:[%s777_s4] ss:$0 sm:$0xff] }
  0x3f   :  { %v432_v42 = vld [vmem:[%s779_s6] ss:$0 sm:$0xff] }
  0x40   :  { %473 = vmatpush3.bf16.msra.mxu0 %v537_v3  ;;  %493 = vmatpush3.bf16.msra.mxu1 %v545_v8 }
  0x41   :  { %474 = vmatprep.subr.bf16.mxu0 %v634_v0  ;;  %494 = vmatprep.subr.bf16.mxu1 %v634_v0 }
  0x44   :  { %475 = vmatpush3.bf16.msra.mxu0 %v538_v5  ;;  %495 = vmatpush3.bf16.msra.mxu1 %v546_v10 }
  0x45   :  { %476 = vmatprep.subr.bf16.mxu0 %v634_v0  ;;  %496 = vmatprep.subr.bf16.mxu1 %v634_v0 }
  0x48   :  { %477 = vmatpush3.bf16.msra.mxu0 %v539_v7  ;;  %497 = vmatpush3.bf16.msra.mxu1 %v547_v12 }
  0x49   :  { %478 = vmatprep.subr.bf16.mxu0 %v634_v0  ;;  %498 = vmatprep.subr.bf16.mxu1 %v634_v0 }
  0x4c   :  { %479 = vmatpush3.bf16.msra.mxu0 %v540_v9  ;;  %499 = vmatpush3.bf16.msra.mxu1 %v548_v14 }
  0x4d   :  { %480 = vmatprep.subr.bf16.mxu0 %v634_v0  ;;  %500 = vmatprep.subr.bf16.mxu1 %v634_v0 }
  0x50   :  { %481 = vmatpush3.bf16.msra.mxu0 %v541_v11  ;;  %501 = vmatpush3.bf16.msra.mxu1 %v549_v16 }
  0x51   :  { %482 = vmatprep.subr.bf16.mxu0 %v634_v0  ;;  %502 = vmatprep.subr.bf16.mxu1 %v634_v0 }
  0x54   :  { %483 = vmatpush3.bf16.msra.mxu0 %v542_v13  ;;  %503 = vmatpush3.bf16.msra.mxu1 %v550_v17 }
  0x55   :  { %508 = vmatprep.subr.bf16.mxu0 %v634_v0 }
  0x57   :  { %485 = vmatmul.mubr.bf16.vlgmr.msra.gmra.mrb[0].mxu0 %v68_v15 }
  0x58   :  { %524 = vmatprep.mubr.msk.bf16.mxu0 %vm635_vm0, %v634_v0  ;;  %509 = vmatpush3.bf16.msra.mxu0 %v551_v18 }
  0x59   :  { %510 = vmatprep.subr.bf16.mxu0 %v634_v0 }
  0x5c   :  { %511 = vmatpush3.bf16.msra.mxu0 %v552_v19 }
  0x5d   :  { %512 = vmatprep.subr.bf16.mxu0 %v634_v0 }
  0x60   :  { %513 = vmatpush3.bf16.msra.mxu0 %v553_v20 }
  0x61   :  { %514 = vmatprep.subr.bf16.mxu0 %v634_v0 }
  0x64   :  { %515 = vmatpush3.bf16.msra.mxu0 %v554_v21 }
  0x65   :  { %516 = vmatprep.subr.bf16.mxu0 %v634_v0 }
  0x68   :  { %517 = vmatpush3.bf16.msra.mxu0 %v555_v22 }
  0x69   :  { %518 = vmatprep.subr.bf16.mxu0 %v634_v0 }
  0x6c   :  { %519 = vmatpush3.bf16.msra.mxu0 %v556_v23 }
  0x6d   :  { %520 = vmatprep.subr.bf16.mxu0 %v634_v0 }
  0x70   :  { %521 = vmatpush3.bf16.msra.mxu0 %v557_v32 }
  0x71   :  { %522 = vmatprep.subr.bf16.mxu0 %v634_v0 }
  0x74   :  { %523 = vmatpush3.bf16.msra.mxu0 %v558_v33 }
 0x12a   :  { %v174_v25 = vpop.f32.mrb[0].mxu0 }
 0x12b   :  { %v175_v26 = vadd.f32 %v414_v24, %v174_v25  ;;  %v486_v27 = vpop.f32.mrb[1].mxu0 }
 0x12c   :  { %v177_v28 = vpop.f32.mrb[2].mxu0 }
 0x12d   :  { %v180_v29 = vmax.f32 %v175_v26, 0.0  ;;  %v487_v30 = vpop.f32.mrb[3].mxu0 }
 0x12f   :  { %v198_v31 = vpack.c.bf16 %v180_v29, %v180_v29 }
 0x131   :  { %505 = vmatmul.mubr.bf16.vlgmr.msra.gmra.mrb[0].mxu1 %v198_v31 }
 0x204   :  { %v287_v35 = vpop.f32.mrb[0].mxu1 }
 0x205   :  { %v288_v36 = vadd.f32 %v423_v34, %v287_v35  ;;  %v506_v37 = vpop.f32.mrb[1].mxu1 }
 0x206   :  { %v290_v38 = vpop.f32.mrb[2].mxu1 }
 0x207   :  { %v293_v39 = vmax.f32 %v288_v36, 0.0  ;;  %v507_v40 = vpop.f32.mrb[3].mxu1 }
 0x209   :  { %v311_v41 = vpack.c.bf16 %v293_v39, %v293_v39 }
 0x20b   :  { %525 = vmatmul.mubr.bf16.vlgmr.msra.gmra.mrb[4].mxu0 %v311_v41 }
 0x2de   :  { %v400_v43 = vpop.f32.mrb[4].mxu0 }
 0x2df   :  { %v401_v44 = vadd.f32 %v432_v42, %v400_v43  ;;  %v526_v45 = vpop.f32.mrb[5].mxu0 }
 0x2e0   :  { %v403_v46 = vpop.f32.mrb[6].mxu0 }
 0x2e1   :  { %v406_v47 = vmax.f32 %v401_v44, 0.0  ;;  %v527_v48 = vpop.f32.mrb[7].mxu0 }
 0x2e3   :  { %407 = vst [vmem:[%s780_s7] sm:$0xff] %v406_v47 }
 0x2e4   :  { %412 = vsyncpa [#allocation3], 1 }
 0x2e5   :  { %413 = vsyncpa [#allocation5], 1 }

</bundles_post_ra>
